<compile_context>
chip_gen: v7x
topology: tpu7x:2x2x1
jax: 0.10.0
libtpu: 0.0.40
codegen_flags: <defaults>
</compile_context>

<pallas_src>
import functools
import numpy as np
import jax
import jax.numpy as jnp
from jax.experimental import pallas as pl
from jax.experimental.pallas import tpu as pltpu

MODALITIES = 4          # number_modality
TARGETS = 3             # number_targets
FEATURES = (64, 64, 128, 256, 512, 64)
TIMESTEPS = 1000
TEMB_CH = 512

_VMEM_LIMIT = 64 * 1024 * 1024


def _round_up(x, m):
    return (x + m - 1) // m * m


def _largest_divisor(n, cap, mult=8):
    """Largest divisor of n that is a multiple of `mult` and <= cap.
    n itself (full dim -> always a legal block) if n <= cap; falls back to n."""
    if n <= cap:
        return n
    start = (cap // mult) * mult
    for d in range(start, 0, -mult):
        if n % d == 0:
            return d
    return n


# ----------------------------------------------------------------------------
# Generic tiled matmul (1x1 convs, linears) -- bf16 operands, f32 accumulator
# ----------------------------------------------------------------------------
def _matmul_kernel(a_ref, b_ref, o_ref, acc_ref):
    k = pl.program_id(2)

    @pl.when(k == 0)
    def _():
        acc_ref[...] = jnp.zeros_like(acc_ref)

    acc_ref[...] += jnp.dot(a_ref[...], b_ref[...],
                            preferred_element_type=jnp.float32)

    @pl.when(k == pl.num_programs(2) - 1)
    def _():
        o_ref[...] = acc_ref[...]


def pallas_matmul(a, b):
    """(M, K) @ (K, N) -> (M, N) f32.  bf16 MXU operands, f32 accumulation."""
    M, K = a.shape
    K2, N = b.shape
    assert K == K2
    tm = min(512, _round_up(M, 8))
    tn = min(256, _round_up(N, 128))
    if K <= 2048:
        tk = K                        # full-K tile: legal and avoids LHS K-padding
    else:
        tk = 0
        for cand in range(2048, 0, -128):
            if K % cand == 0:
                tk = cand
                break
        if tk == 0:
            tk = 2048
    Mp, Np, Kp = _round_up(M, tm), _round_up(N, tn), _round_up(K, tk)

    a_p = a.astype(jnp.bfloat16)
    b_p = b.astype(jnp.bfloat16)
    if (Mp, Kp) != (M, K):
        a_p = jnp.pad(a_p, ((0, Mp - M), (0, Kp - K)))
    if (Kp, Np) != (K, N):
        b_p = jnp.pad(b_p, ((0, Kp - K), (0, Np - N)))

    out = pl.pallas_call(
        _matmul_kernel,
        out_shape=jax.ShapeDtypeStruct((Mp, Np), jnp.float32),
        grid=(Mp // tm, Np // tn, Kp // tk),
        in_specs=[pl.BlockSpec((tm, tk), lambda i, j, k: (i, k)),
                  pl.BlockSpec((tk, tn), lambda i, j, k: (k, j))],
        out_specs=pl.BlockSpec((tm, tn), lambda i, j, k: (i, j)),
        scratch_shapes=[pltpu.VMEM((tm, tn), jnp.float32)],
        compiler_params=pltpu.CompilerParams(
            dimension_semantics=("parallel", "parallel", "arbitrary"),
            vmem_limit_bytes=_VMEM_LIMIT),
    )(a_p, b_p)
    if (Mp, Np) != (M, N):
        out = out[:M, :N]
    return out


# ----------------------------------------------------------------------------
# Conv3d(k=3, stride=1, 'same') as a shift-and-accumulate Pallas kernel
# ----------------------------------------------------------------------------
def _conv3x3x3_kernel(x0_ref, x1_ref, x2_ref, w_ref, b_ref, o_ref, *,
                      cin, stride, m):
    # x*_ref: (1, 1, P, Cin) bf16 padded plane at depths d, d+1, d+2
    # w_ref:  (27*Cin, tn)   bf16 (tap order kd, kh, kw, cin)
    # b_ref:  (1, tn)        f32
    # o_ref:  (1, 1, M, tn)  f32, flat (h, w) plane incl. horizontal-pad columns
    acc = jnp.zeros((m, o_ref.shape[3]), jnp.float32)
    for kd, xr in enumerate((x0_ref, x1_ref, x2_ref)):
        for kh in range(3):
            for kw in range(3):
                tap = kd * 9 + kh * 3 + kw
                win = xr[0, 0, pl.ds(kh * stride + kw, m), :]      # (M, Cin)
                wt = w_ref[pl.ds(tap * cin, cin), :]               # (Cin, tn)
                acc = acc + jnp.dot(win, wt,
                                    preferred_element_type=jnp.float32)
    o_ref[0, 0] = acc + b_ref[...]


def conv3x3x3(x, w, b):
    """x: (B, D, H, W, Cin) f32; w: (27*Cin, Cout); b: (Cout,)."""
    B, D, H, W, C = x.shape
    Cout = w.shape[1]
    S = W + 2                       # flat-plane row stride
    P = (H + 3) * S                 # padded plane length (extra bottom row
    M = H * S                       #   absorbs the tap-window over-run)
    tn = 256 if (Cout > 256 and Cout % 256 == 0) else Cout

    xp = jnp.pad(x, ((0, 0), (1, 1), (1, 2), (1, 1), (0, 0))).astype(jnp.bfloat16)
    xf = xp.reshape(B, D + 2, P, C)
    wb = w.astype(jnp.bfloat16)
    b2 = b.reshape(1, Cout).astype(jnp.float32)

    kernel = functools.partial(_conv3x3x3_kernel, cin=C, stride=S, m=M)
    out = pl.pallas_call(
        kernel,
        out_shape=jax.ShapeDtypeStruct((B, D, M, Cout), jnp.float32),
        grid=(B, D, Cout // tn),
        in_specs=[
            pl.BlockSpec((1, 1, P, C), lambda bb, dd, jj: (bb, dd, 0, 0)),
            pl.BlockSpec((1, 1, P, C), lambda bb, dd, jj: (bb, dd + 1, 0, 0)),
            pl.BlockSpec((1, 1, P, C), lambda bb, dd, jj: (bb, dd + 2, 0, 0)),
            pl.BlockSpec((27 * C, tn), lambda bb, dd, jj: (0, jj)),
            pl.BlockSpec((1, tn), lambda bb, dd, jj: (0, jj)),
        ],
        out_specs=pl.BlockSpec((1, 1, M, tn), lambda bb, dd, jj: (bb, dd, 0, jj)),
        compiler_params=pltpu.CompilerParams(
            dimension_semantics=("parallel", "parallel", "parallel"),
            vmem_limit_bytes=_VMEM_LIMIT),
    )(xf, xf, xf, wb, b2)
    # drop the horizontal-pad (garbage) columns
    return out.reshape(B, D, H, S, Cout)[:, :, :, :W, :]


# ----------------------------------------------------------------------------
# InstanceNorm3d(affine) + LeakyReLU(0.1) + per-channel add, spatially tiled
# ----------------------------------------------------------------------------
def _in_stats_kernel(x_ref, o_ref):
    x = x_ref[0].astype(jnp.float32)                     # (tv, C)
    o_ref[0, 0, 0:1, :] = jnp.sum(x, axis=0, keepdims=True)
    o_ref[0, 0, 1:2, :] = jnp.sum(x * x, axis=0, keepdims=True)


def _in_apply_kernel(x_ref, sc_ref, sh_ref, ad_ref, o_ref):
    x = x_ref[0]                                         # (tv, C)
    y = x * sc_ref[0] + sh_ref[0]                        # normalize + affine
    y = jnp.where(y >= 0.0, y, 0.1 * y)                  # LeakyReLU(0.1)
    o_ref[0] = y + ad_ref[0]                             # fused time-emb add


def instance_norm_lrelu(x, gamma, beta, post_add):
    """x: (B, V, C) f32; gamma/beta: (C,); post_add: (B, C)."""
    B, V, C = x.shape
    cap = max(8, (2 * 1024 * 1024) // (4 * C))           # ~2 MB per block
    tv = _largest_divisor(V, cap, 8)
    nchunks = V // tv

    stats = pl.pallas_call(
        _in_stats_kernel,
        out_shape=jax.ShapeDtypeStruct((B, nchunks, 2, C), jnp.float32),
        grid=(B, nchunks),
        in_specs=[pl.BlockSpec((1, tv, C), lambda b, j: (b, j, 0))],
        out_specs=pl.BlockSpec((1, 1, 2, C), lambda b, j: (b, j, 0, 0)),
        compiler_params=pltpu.CompilerParams(
            dimension_semantics=("parallel", "parallel"),
            vmem_limit_bytes=_VMEM_LIMIT),
    )(x)

    s = jnp.sum(stats, axis=1)                           # (B, 2, C)
    mean = s[:, 0] / V
    var = jnp.maximum(s[:, 1] / V - mean * mean, 0.0)    # biased var (torch IN)
    scale = gamma[None, :] * jax.lax.rsqrt(var + 1e-5)   # (B, C)
    shift = beta[None, :] - mean * scale

    return pl.pallas_call(
        _in_apply_kernel,
        out_shape=jax.ShapeDtypeStruct((B, V, C), jnp.float32),
        grid=(B, nchunks),
        in_specs=[pl.BlockSpec((1, tv, C), lambda b, j: (b, j, 0)),
                  pl.BlockSpec((1, 1, C), lambda b, j: (b, 0, 0)),
                  pl.BlockSpec((1, 1, C), lambda b, j: (b, 0, 0)),
                  pl.BlockSpec((1, 1, C), lambda b, j: (b, 0, 0))],
        out_specs=pl.BlockSpec((1, tv, C), lambda b, j: (b, j, 0)),
        compiler_params=pltpu.CompilerParams(
            dimension_semantics=("parallel", "parallel"),
            vmem_limit_bytes=_VMEM_LIMIT),
    )(x, scale.reshape(B, 1, C), shift.reshape(B, 1, C),
      post_add.reshape(B, 1, C))


# ----------------------------------------------------------------------------
# Diffusion q_sample, tiled lane-dense chunks + SMEM per-batch scalars
# ----------------------------------------------------------------------------
def _q_sample_kernel(c1_ref, c2_ref, x_ref, n_ref, o_ref):
    b = pl.program_id(0)
    o_ref[...] = c1_ref[b] * x_ref[...] + c2_ref[b] * n_ref[...]


def pallas_q_sample(x, noise, c1, c2):
    """x, noise: (B, N) f32; c1/c2: (B,) per-batch diffusion coefficients."""
    B, N = x.shape
    cols = 128 if N % 128 == 0 else N
    rows = N // cols
    rt = _largest_divisor(rows, 4096, 8)
    nchunks = rows // rt
    x3 = x.reshape(B, rows, cols)
    n3 = noise.reshape(B, rows, cols)

    out = pl.pallas_call(
        _q_sample_kernel,
        out_shape=jax.ShapeDtypeStruct((B, rows, cols), jnp.float32),
        grid=(B, nchunks),
        in_specs=[pl.BlockSpec(memory_space=pltpu.MemorySpace.SMEM),
                  pl.BlockSpec(memory_space=pltpu.MemorySpace.SMEM),
                  pl.BlockSpec((1, rt, cols), lambda b, j: (b, j, 0)),
                  pl.BlockSpec((1, rt, cols), lambda b, j: (b, j, 0))],
        out_specs=pl.BlockSpec((1, rt, cols), lambda b, j: (b, j, 0)),
        compiler_params=pltpu.CompilerParams(
            dimension_semantics=("parallel", "parallel"),
            vmem_limit_bytes=_VMEM_LIMIT),
    )(c1.astype(jnp.float32), c2.astype(jnp.float32), x3, n3)
    return out.reshape(B, N)


# ----------------------------------------------------------------------------
# JAX glue: conv wrappers, pooling, upsampling, embeddings
# ----------------------------------------------------------------------------
def conv_norm_act(x, p, post_add=None):
    """MONAI Convolution: Conv3d(k=3, pad=1) -> InstanceNorm(affine) ->
    LeakyReLU(0.1), optionally followed by a per-channel time-emb add."""
    y = conv3x3x3(x, p['w'], p['b'])
    B, D, H, W, Co = y.shape
    if post_add is None:
        post_add = jnp.zeros((B, Co), jnp.float32)
    y = instance_norm_lrelu(y.reshape(B, D * H * W, Co),
                            p['gamma'], p['beta'], post_add)
    return y.reshape(B, D, H, W, Co)


def conv1x1(x, w, b):
    B, D, H, W, C = x.shape
    Cout = w.shape[1]
    y = pallas_matmul(x.reshape(B * D * H * W, C), w) + b[None, :]
    return y.reshape(B, D, H, W, Cout)


def linear(x, w, b):
    return pallas_matmul(x, w) + b[None, :]


def max_pool2(x):
    B, D, H, W, C = x.shape
    x = x.reshape(B, D // 2, 2, H // 2, 2, W // 2, 2, C)
    return jnp.max(x, axis=(2, 4, 6))


def upsample2x_trilinear_ac(x):
    """nn.Upsample(scale_factor=2, mode='trilinear', align_corners=True), NDHWC."""
    def up_axis(v, axis):
        n = v.shape[axis]
        out = 2 * n
        if n == 1:
            return jnp.concatenate([v, v], axis=axis)
        coords = jnp.arange(out, dtype=jnp.float32) * (n - 1) / (out - 1)
        i0 = jnp.floor(coords).astype(jnp.int32)
        i1 = jnp.minimum(i0 + 1, n - 1)
        w = coords - i0.astype(jnp.float32)
        v0 = jnp.take(v, i0, axis=axis)
        v1 = jnp.take(v, i1, axis=axis)
        shape = [1] * v.ndim
        shape[axis] = out
        w = w.reshape(shape)
        return v0 * (1.0 - w) + v1 * w

    for ax in (1, 2, 3):
        x = up_axis(x, ax)
    return x


def swish(x):
    return x * jax.nn.sigmoid(x)


def timestep_embedding(t, dim=128):
    # DDPM-style embedding (as used by Diff-UNet's BasicUNetDe): divide by half-1.
    half = dim // 2
    freqs = jnp.exp(-np.log(10000.0) * jnp.arange(half, dtype=jnp.float32) / (half - 1))
    args = t.astype(jnp.float32)[:, None] * freqs[None, :]
    return jnp.concatenate([jnp.sin(args), jnp.cos(args)], axis=1)


# ----------------------------------------------------------------------------
# Parameters (deterministic synthetic init — shapes from DiffUNet.__init__)
# ----------------------------------------------------------------------------
def _conv3_block(key, cin, cout):
    w = jax.random.normal(key, (27 * cin, cout), jnp.float32) / np.sqrt(27 * cin)
    return {'w': w, 'b': jnp.zeros((cout,), jnp.float32),
            'gamma': jnp.ones((cout,), jnp.float32),
            'beta': jnp.zeros((cout,), jnp.float32)}


def _lin(key, i, o):
    return {'w': jax.random.normal(key, (i, o), jnp.float32) / np.sqrt(i),
            'b': jnp.zeros((o,), jnp.float32)}


def _two_conv(key, cin, cout, temb_dim=None):
    k0, k1, k2 = jax.random.split(key, 3)
    p = {'c0': _conv3_block(k0, cin, cout), 'c1': _conv3_block(k1, cout, cout)}
    if temb_dim is not None:
        tp = _lin(k2, temb_dim, cout)
        p['temb_w'], p['temb_b'] = tp['w'], tp['b']
    return p


def init_params(key):
    fea = FEATURES
    keys = iter(jax.random.split(key, 32))
    enc = {
        'conv_0': _two_conv(next(keys), MODALITIES, fea[0]),
        'down_1': _two_conv(next(keys), fea[0], fea[1]),
        'down_2': _two_conv(next(keys), fea[1], fea[2]),
        'down_3': _two_conv(next(keys), fea[2], fea[3]),
        'down_4': _two_conv(next(keys), fea[3], fea[4]),
    }
    dec = {
        'temb_dense0': _lin(next(keys), 128, TEMB_CH),
        'temb_dense1': _lin(next(keys), TEMB_CH, TEMB_CH),
        'conv_0': _two_conv(next(keys), MODALITIES + TARGETS, fea[0], TEMB_CH),
        'down_1': _two_conv(next(keys), fea[0], fea[1], TEMB_CH),
        'down_2': _two_conv(next(keys), fea[1], fea[2], TEMB_CH),
        'down_3': _two_conv(next(keys), fea[2], fea[3], TEMB_CH),
        'down_4': _two_conv(next(keys), fea[3], fea[4], TEMB_CH),
        # UpCat(in, cat, out): halves=True -> 1x1 pre-conv in->in//2 before upsample
        'upcat_4': {'pre': _lin(next(keys), fea[4], fea[3]),
                    'convs': _two_conv(next(keys), fea[3] + fea[3], fea[3], TEMB_CH)},
        'upcat_3': {'pre': _lin(next(keys), fea[3], fea[2]),
                    'convs': _two_conv(next(keys), fea[2] + fea[2], fea[2], TEMB_CH)},
        'upcat_2': {'pre': _lin(next(keys), fea[2], fea[1]),
                    'convs': _two_conv(next(keys), fea[1] + fea[1], fea[1], TEMB_CH)},
        'upcat_1': {'pre': None,   # halves=False -> no pre-conv
                    'convs': _two_conv(next(keys), fea[1] + fea[0], fea[5], TEMB_CH)},
        'final': _lin(next(keys), fea[5], TARGETS),
    }
    return {'encoder': enc, 'decoder': dec}


# ----------------------------------------------------------------------------
# Model forward (BasicUNetEncoder / BasicUNetDe)
# ----------------------------------------------------------------------------
def two_conv_enc(p, x):
    x = conv_norm_act(x, p['c0'])
    return conv_norm_act(x, p['c1'])


def encoder_forward(p, image):
    x0 = two_conv_enc(p['conv_0'], image)
    x1 = two_conv_enc(p['down_1'], max_pool2(x0))
    x2 = two_conv_enc(p['down_2'], max_pool2(x1))
    x3 = two_conv_enc(p['down_3'], max_pool2(x2))
    x4 = two_conv_enc(p['down_4'], max_pool2(x3))
    return [x0, x1, x2, x3, x4]


def two_conv_dec(p, x, temb):
    proj = linear(swish(temb), p['temb_w'], p['temb_b'])          # (B, Cout)
    x = conv_norm_act(x, p['c0'], post_add=proj)                  # conv0(x) + temb_proj
    return conv_norm_act(x, p['c1'])


def upcat(p, x, x_e, temb):
    if p['pre'] is not None:
        x = conv1x1(x, p['pre']['w'], p['pre']['b'])
    x = upsample2x_trilinear_ac(x)
    # TODO(synk): fuse this concat into the following conv (two K segments) to
    # avoid materializing the concatenated feature map in HBM.
    x = jnp.concatenate([x_e, x], axis=-1)                        # cat([x_e, x_0], dim=1)
    return two_conv_dec(p['convs'], x, temb)


def decoder_forward(p, x, t, image, embeddings):
    temb = timestep_embedding(t, 128)
    temb = linear(temb, p['temb_dense0']['w'], p['temb_dense0']['b'])
    temb = swish(temb)
    temb = linear(temb, p['temb_dense1']['w'], p['temb_dense1']['b'])

    x = jnp.concatenate([image, x], axis=-1)                      # cat([image, x], dim=1)
    x0 = two_conv_dec(p['conv_0'], x, temb) + embeddings[0]
    x1 = two_conv_dec(p['down_1'], max_pool2(x0), temb) + embeddings[1]
    x2 = two_conv_dec(p['down_2'], max_pool2(x1), temb) + embeddings[2]
    x3 = two_conv_dec(p['down_3'], max_pool2(x2), temb) + embeddings[3]
    x4 = two_conv_dec(p['down_4'], max_pool2(x3), temb) + embeddings[4]

    u4 = upcat(p['upcat_4'], x4, x3, temb)
    u3 = upcat(p['upcat_3'], u4, x2, temb)
    u2 = upcat(p['upcat_2'], u3, x1, temb)
    u1 = upcat(p['upcat_1'], u2, x0, temb)
    return conv1x1(u1, p['final']['w'], p['final']['b'])


# ----------------------------------------------------------------------------
# Diffusion schedule (linear betas, 1000 steps; SpacedDiffusion([1000]) == base)
# ----------------------------------------------------------------------------
def make_diffusion_constants(n=TIMESTEPS):
    scale = 1000.0 / n
    betas = np.linspace(scale * 1e-4, scale * 0.02, n, dtype=np.float64)
    acp = np.cumprod(1.0 - betas)
    return (jnp.asarray(np.sqrt(acp), jnp.float32),
            jnp.asarray(np.sqrt(1.0 - acp), jnp.float32))


def diff_unet_forward(params, diff_consts, image=None, x=None, pred_type=None,
                      step=None, rng=None):
    """Mirrors DiffUNet.forward; image / x are PyTorch-layout NCDHW arrays."""
    sqrt_acp, sqrt_1macp = diff_consts
    if pred_type == 'q_sample':
        B, C, D, H, W = x.shape
        k_noise, k_t = jax.random.split(rng)
        noise = jax.random.normal(k_noise, x.shape, jnp.float32)
        t = jax.random.randint(k_t, (B,), 0, TIMESTEPS)           # UniformSampler(1000)
        xt = pallas_q_sample(x.reshape(B, C * D * H * W).astype(jnp.float32),
                             noise.reshape(B, C * D * H * W),
                             sqrt_acp[t], sqrt_1macp[t])
        return xt.reshape(B, C, D, H, W), t, noise
    elif pred_type == 'denoise':
        img = jnp.transpose(image, (0, 2, 3, 4, 1)).astype(jnp.float32)  # NCDHW->NDHWC
        xx = jnp.transpose(x, (0, 2, 3, 4, 1)).astype(jnp.float32)
        embeddings = encoder_forward(params['encoder'], img)
        out = decoder_forward(params['decoder'], xx, step, img, embeddings)
        return jnp.transpose(out, (0, 4, 1, 2, 3))                        # back to NCDHW
    elif pred_type == 'ddim_sample':
        # TODO(synk): 50-step DDIM sampling loop (ddim_sample_loop) not implemented;
        # it is a Python loop over the 'denoise' path + DDIM update rule.
        raise NotImplementedError("ddim_sample loop not implemented in this synthetic kernel")
    else:
        raise ValueError(pred_type)


# ----------------------------------------------------------------------------
if __name__ == "__main__":
    key = jax.random.PRNGKey(0)
    kp, kimg, kx, kq = jax.random.split(key, 4)

    params = init_params(kp)
    diff_consts = make_diffusion_constants()

    B, S = 1, 16                                  # small stand-in for (1, ., 96, 96, 96)
    image = jax.random.normal(kimg, (B, MODALITIES, S, S, S), jnp.float32)
    x_start = jax.random.uniform(kx, (B, TARGETS, S, S, S), jnp.float32) * 2.0 - 1.0

    # pred_type='q_sample'
    x_t, t, noise = diff_unet_forward(params, diff_consts, x=x_start,
                                      pred_type='q_sample', rng=kq)
    # pred_type='denoise'
    logits = diff_unet_forward(params, diff_consts, image=image, x=x_t,
                               pred_type='denoise', step=t)

    jax.block_until_ready((x_t, t, noise, logits))
    assert x_t.shape == (B, TARGETS, S, S, S)
    assert logits.shape == (B, TARGETS, S, S, S)
    assert bool(jnp.all(jnp.isfinite(logits)))
    print("KERNEL_OK")
</pallas_src>

<mosaic_0001>
module attributes {stable_mosaic.version = 11 : i64} {
  func.func @_q_sample_kernel(%arg0: i32, %arg1: i32, %arg2: memref<1xf32, #tpu.memory_space<smem>>, %arg3: memref<1xf32, #tpu.memory_space<smem>>, %arg4: memref<1x96x128xf32, #tpu.memory_space<vmem>>, %arg5: memref<1x96x128xf32, #tpu.memory_space<vmem>>, %arg6: memref<1x96x128xf32, #tpu.memory_space<vmem>>) attributes {dimension_semantics = [#tpu.dimension_semantics<parallel>, #tpu.dimension_semantics<parallel>], iteration_bounds = array<i64: 1, 1>, scalar_prefetch = 0 : i64, scratch_operands = 0 : i64, tpu.core_type = #tpu.core_type<tc>, window_params = [{transform_indices = @transform_0, window_bounds = array<i64: 1>}, {transform_indices = @transform_1, window_bounds = array<i64: 1>}, {transform_indices = @transform_2, window_bounds = array<i64: 1, 96, 128>}, {transform_indices = @transform_3, window_bounds = array<i64: 1, 96, 128>}, {transform_indices = @transform_4, window_bounds = array<i64: 1, 96, 128>}]} {
    %0 = arith.index_cast %arg0 : i32 to index
    %1 = memref.load %arg2[%0] : memref<1xf32, #tpu.memory_space<smem>>
    %c0 = arith.constant 0 : index
    %c0_0 = arith.constant 0 : index
    %c0_1 = arith.constant 0 : index
    %2 = vector.load %arg4[%c0, %c0_0, %c0_1] : memref<1x96x128xf32, #tpu.memory_space<vmem>>, vector<1x96x128xf32>
    %3 = vector.broadcast %1 : f32 to vector<1x96x128xf32>
    %4 = arith.mulf %3, %2 : vector<1x96x128xf32>
    %5 = arith.index_cast %arg0 : i32 to index
    %6 = memref.load %arg3[%5] : memref<1xf32, #tpu.memory_space<smem>>
    %c0_2 = arith.constant 0 : index
    %c0_3 = arith.constant 0 : index
    %c0_4 = arith.constant 0 : index
    %7 = vector.load %arg5[%c0_2, %c0_3, %c0_4] : memref<1x96x128xf32, #tpu.memory_space<vmem>>, vector<1x96x128xf32>
    %8 = vector.broadcast %6 : f32 to vector<1x96x128xf32>
    %9 = arith.mulf %8, %7 : vector<1x96x128xf32>
    %10 = arith.addf %4, %9 : vector<1x96x128xf32>
    %c0_5 = arith.constant 0 : index
    %c0_6 = arith.constant 0 : index
    %c0_7 = arith.constant 0 : index
    %11 = vector.load %arg6[%c0_5, %c0_6, %c0_7] : memref<1x96x128xf32, #tpu.memory_space<vmem>>, vector<1x96x128xf32>
    tpu.vector_store %arg6[%c0_5, %c0_6, %c0_7], %10 {strides = array<i32>} : memref<1x96x128xf32, #tpu.memory_space<vmem>>, vector<1x96x128xf32>,
    return
  }
  func.func @transform_0(%arg0: i32, %arg1: i32) -> i32 {
    %c0_i32 = arith.constant 0 : i32
    %c0_i32_0 = arith.constant 0 : i32
    return %c0_i32 : i32
  }
  func.func @transform_1(%arg0: i32, %arg1: i32) -> i32 {
    %c0_i32 = arith.constant 0 : i32
    %c0_i32_0 = arith.constant 0 : i32
    return %c0_i32 : i32
  }
  func.func @transform_2(%arg0: i32, %arg1: i32) -> (i32, i32, i32) {
    %c0_i32 = arith.constant 0 : i32
    %c0_i32_0 = arith.constant 0 : i32
    return %arg0, %arg1, %c0_i32 : i32, i32, i32
  }
  func.func @transform_3(%arg0: i32, %arg1: i32) -> (i32, i32, i32) {
    %c0_i32 = arith.constant 0 : i32
    %c0_i32_0 = arith.constant 0 : i32
    return %arg0, %arg1, %c0_i32 : i32, i32, i32
  }
  func.func @transform_4(%arg0: i32, %arg1: i32) -> (i32, i32, i32) {
    %c0_i32 = arith.constant 0 : i32
    %c0_i32_0 = arith.constant 0 : i32
    return %arg0, %arg1, %c0_i32 : i32, i32, i32
  }
}

</mosaic_0001>

<bundles_post_ra>
// kernel: tpu_custom_call.1
= control target key start
LH: loop header
LB: loop body
LE: loop exit
PB: predicated region body
PF: predicated region fallthrough
CT: control target
= control target key end

     0   :  { %11 = vsyncpa [#allocation5], 0  ;;  %s328_s0 = inlined_call_operand.<no memory space> [shape: f32[1], index: 0, kind: input, shape index: {}]   ;;  %s329_s1 = inlined_call_operand.<no memory space> [shape: f32[1], index: 1, kind: input, shape index: {}]   ;;  %s330_s2 = inlined_call_operand.hbm [shape: f32[1,96,128], index: 2, kind: input, shape index: {}]   ;;  %s331_s3 = inlined_call_operand.hbm [shape: f32[1,96,128], index: 3, kind: input, shape index: {}]   ;;  %s332_s4 = inlined_call_operand.hbm [shape: f32[1,96,128], index: 4, kind: output, shape index: {}]  }
   0x1   :  { %12 = vsyncpa [#allocation8], 0 }
   0x2   :  { %13 = vsyncpa [#allocation6], 0  ;;  %s219_s15 = smov [#allocation4]   ;;  %s147_s19 = scalar_lea.hbm %s330_s2, 1536 }
   0x3   :  { %s23_s16 = sshll.u32 %s219_s15, 4  ;;  %p148_p0 = scmp.ne.s32.totalorder %s330_s2, %s147_s19  ;;  %s24_s16 = int_to_ptr.vmem [resolvable:$true] %s23_s16 }
   0x4   :  { %p151_p1 = scmp.lt.u32.totalorder %s147_s19, %s330_s2 }
   0x6   :  { %p153_p2 = pnand %p151_p1, %p148_p0 }
   0x8   :  { %156 = shalt.err (!%p153_p2)
}
   0x9   :  { %s157_s24 = scalar_lea.vmem %s24_s16, 1536  ;;  %p162_p4 = scmp.lt.s32.totalorder %s24_s16, %s24_s16 }
   0xa   :  { %p158_p3 = scmp.ne.s32.totalorder %s24_s16, %s157_s24  ;;  %p163_p5 = scmp.lt.s32.totalorder %s157_s24, %s157_s24 }
   0xc   :  { %p164_p6 = por %p163_p5, %p162_p4 }
   0xe   :  { %p165_p7 = pnand %p164_p6, %p158_p3 }
  0x10   :  { %168 = shalt.err (!%p165_p7)
}
  0x11   :  { %s220_s25 = smov 128   ;;  %s221_s26 = smov 8  }
  0x12   :  { %29 = dma.hbm_to_vmem [thread:$0]  %s330_s2, 1536, %s24_s16, [#allocation5], %s220_s25, %s220_s25, %s221_s26  }
  0x13   :  { %s222_s29 = smov [#allocation7]   ;;  %s169_s7 = scalar_lea.hbm %s331_s3, 1536 }
  0x14   :  { %s35_s30 = sshll.u32 %s222_s29, 4  ;;  %p170_p8 = scmp.ne.s32.totalorder %s331_s3, %s169_s7  ;;  %s36_s30 = int_to_ptr.vmem [resolvable:$true] %s35_s30 }
  0x15   :  { %p173_p9 = scmp.lt.u32.totalorder %s169_s7, %s331_s3 }
  0x17   :  { %p175_p10 = pnand %p173_p9, %p170_p8 }
  0x19   :  { %178 = shalt.err (!%p175_p10)
}
  0x1a   :  { %s179_s12 = scalar_lea.vmem %s36_s30, 1536  ;;  %p184_p12 = scmp.lt.s32.totalorder %s36_s30, %s36_s30 }
  0x1b   :  { %p180_p11 = scmp.ne.s32.totalorder %s36_s30, %s179_s12  ;;  %p185_p13 = scmp.lt.s32.totalorder %s179_s12, %s179_s12 }
  0x1d   :  { %p186_p0 = por %p185_p13, %p184_p12 }
  0x1f   :  { %p187_p1 = pnand %p186_p0, %p180_p11 }
  0x21   :  { %190 = shalt.err (!%p187_p1)
}
  0x22   :  { %41 = dma.hbm_to_vmem [thread:$0]  %s331_s3, 1536, %s36_s30, [#allocation8], %s220_s25, %s220_s25, %s221_s26  }
  0x23   :  { %213 = dma.done.wait [#allocation5], 1536  }
  0x24   :  { %214 = vsyncadd [#allocation5], 4294965760 }
  0x25   :  { %215 = dma.done.wait [#allocation8], 1536  }
  0x26   :  { %216 = vsyncadd [#allocation8], 4294965760  ;;  %v282_v0 = vstv %s328_s0  ;;  %v287_v1 = vstv %s329_s1  ;;  %v49_v2 = vld [vmem:[#allocation4] sm:$0xff]  ;;  %v50_v4 = vld [vmem:[#allocation4 + $0x8] sm:$0xff]  ;;  %s223_s0 = smov [#allocation9]  }
  0x27   :  { %v75_v3 = vld [vmem:[#allocation7] sm:$0xff]  ;;  %v62_v5 = vmul.f32 %v282_v0, %v49_v2  ;;  %v63_v7 = vmul.f32 %v282_v0, %v50_v4  ;;  %v76_v8 = vld [vmem:[#allocation7 + $0x8] sm:$0xff]  ;;  %v51_v9 = vld [vmem:[#allocation4 + $0x10] sm:$0xff]  ;;  %s129_s1 = sshll.u32 %s223_s0, 4  ;;  %s130_s1 = int_to_ptr.vmem [resolvable:$true] %s129_s1 }
  0x28   :  { %v88_v6 = vmul.f32 %v287_v1, %v75_v3  ;;  %v77_v10 = vld [vmem:[#allocation7 + $0x10] sm:$0xff]  ;;  %v89_v11 = vmul.f32 %v287_v1, %v76_v8  ;;  %v64_v12 = vmul.f32 %v282_v0, %v51_v9  ;;  %v52_v14 = vld [vmem:[#allocation4 + $0x18] sm:$0xff]  ;;  %v53_v16 = vld [vmem:[#allocation4 + $0x20] sm:$0xff]  ;;  %s191_s3 = scalar_lea.vmem %s130_s1, 1536  ;;  %p196_p3 = scmp.lt.s32.totalorder %s130_s1, %s130_s1 }
  0x29   :  { %v90_v13 = vmul.f32 %v287_v1, %v77_v10  ;;  %v78_v15 = vld [vmem:[#allocation7 + $0x18] sm:$0xff]  ;;  %v65_v18 = vmul.f32 %v282_v0, %v52_v14  ;;  %v66_v20 = vmul.f32 %v282_v0, %v53_v16  ;;  %v79_v21 = vld [vmem:[#allocation7 + $0x20] sm:$0xff]  ;;  %v54_v22 = vld [vmem:[#allocation4 + $0x28] sm:$0xff]  ;;  %p192_p2 = scmp.ne.s32.totalorder %s130_s1, %s191_s3  ;;  %p197_p4 = scmp.lt.s32.totalorder %s191_s3, %s191_s3 }
  0x2a   :  { %v100_v17 = vadd.f32 %v88_v6, %v62_v5  ;;  %v91_v19 = vmul.f32 %v287_v1, %v78_v15  ;;  %v80_v23 = vld [vmem:[#allocation7 + $0x28] sm:$0xff]  ;;  %v101_v24 = vadd.f32 %v89_v11, %v63_v7  ;;  %v92_v26 = vmul.f32 %v287_v1, %v79_v21  ;;  %v55_v28 = vld [vmem:[#allocation4 + $0x30] sm:$0xff]  ;;  %v56_v30 = vld [vmem:[#allocation4 + $0x38] sm:$0xff] }
  0x2b   :  { %v102_v25 = vadd.f32 %v90_v13, %v64_v12  ;;  %v67_v27 = vmul.f32 %v282_v0, %v54_v22  ;;  %v81_v29 = vld [vmem:[#allocation7 + $0x30] sm:$0xff]  ;;  %v93_v32 = vmul.f32 %v287_v1, %v80_v23  ;;  %v68_v33 = vmul.f32 %v282_v0, %v55_v28  ;;  %v82_v35 = vld [vmem:[#allocation7 + $0x38] sm:$0xff]  ;;  %v57_v36 = vld [vmem:[#allocation4 + $0x40] sm:$0xff]  ;;  %p198_p5 = por %p197_p4, %p196_p3 }
  0x2c   :  { %112 = vst [vmem:[#allocation9] sm:$0xff] %v100_v17  ;;  %v103_v31 = vadd.f32 %v91_v19, %v65_v18  ;;  %v94_v34 = vmul.f32 %v287_v1, %v81_v29  ;;  %v83_v37 = vld [vmem:[#allocation7 + $0x40] sm:$0xff]  ;;  %113 = vst [vmem:[#allocation9 + $0x8] sm:$0xff] %v101_v24  ;;  %v104_v38 = vadd.f32 %v92_v26, %v66_v20  ;;  %v58_v42 = vld [vmem:[#allocation4 + $0x48] sm:$0xff] }
  0x2d   :  { %114 = vst [vmem:[#allocation9 + $0x10] sm:$0xff] %v102_v25  ;;  %v69_v39 = vmul.f32 %v282_v0, %v56_v30  ;;  %v95_v40 = vmul.f32 %v287_v1, %v82_v35  ;;  %v70_v41 = vmul.f32 %v282_v0, %v57_v36  ;;  %v84_v43 = vld [vmem:[#allocation7 + $0x48] sm:$0xff]  ;;  %v59_v44 = vld [vmem:[#allocation4 + $0x50] sm:$0xff]  ;;  %v105_v45 = vadd.f32 %v93_v32, %v67_v27  ;;  %v60_v50 = vld [vmem:[#allocation4 + $0x58] sm:$0xff]  ;;  %p199_p6 = pnand %p198_p5, %p192_p2 }
  0x2e   :  { %115 = vst [vmem:[#allocation9 + $0x18] sm:$0xff] %v103_v31  ;;  %v106_v46 = vadd.f32 %v94_v34, %v68_v33  ;;  %v96_v47 = vmul.f32 %v287_v1, %v83_v37  ;;  %v71_v48 = vmul.f32 %v282_v0, %v58_v42  ;;  %v85_v49 = vld [vmem:[#allocation7 + $0x50] sm:$0xff]  ;;  %v86_v51 = vld [vmem:[#allocation7 + $0x58] sm:$0xff]  ;;  %116 = vst [vmem:[#allocation9 + $0x20] sm:$0xff] %v104_v38 }
  0x2f   :  { %v107_v52 = vadd.f32 %v95_v40, %v69_v39  ;;  %v97_v53 = vmul.f32 %v287_v1, %v84_v43  ;;  %v72_v54 = vmul.f32 %v282_v0, %v59_v44  ;;  %v98_v55 = vmul.f32 %v287_v1, %v85_v49  ;;  %117 = vst [vmem:[#allocation9 + $0x28] sm:$0xff] %v105_v45 }
  0x30   :  { %118 = vst [vmem:[#allocation9 + $0x30] sm:$0xff] %v106_v46  ;;  %v108_v56 = vadd.f32 %v96_v47, %v70_v41  ;;  %v73_v57 = vmul.f32 %v282_v0, %v60_v50  ;;  %v99_v58 = vmul.f32 %v287_v1, %v86_v51 }
  0x31   :  { %119 = vst [vmem:[#allocation9 + $0x38] sm:$0xff] %v107_v52  ;;  %v109_v59 = vadd.f32 %v97_v53, %v71_v48  ;;  %v110_v60 = vadd.f32 %v98_v55, %v72_v54 }
  0x32   :  { %120 = vst [vmem:[#allocation9 + $0x40] sm:$0xff] %v108_v56  ;;  %v111_v61 = vadd.f32 %v99_v58, %v73_v57 }
  0x33   :  { %121 = vst [vmem:[#allocation9 + $0x48] sm:$0xff] %v109_v59  ;;  %122 = vst [vmem:[#allocation9 + $0x50] sm:$0xff] %v110_v60 }
  0x34   :  { %123 = vst [vmem:[#allocation9 + $0x58] sm:$0xff] %v111_v61 }
  0x35   :  { %202 = shalt.err (!%p199_p6)
}
  0x36   :  { %s203_s20 = scalar_lea.hbm %s332_s4, 1536 }
  0x37   :  { %p204_p7 = scmp.ne.s32.totalorder %s332_s4, %s203_s20  ;;  %p207_p8 = scmp.lt.u32.totalorder %s203_s20, %s332_s4 }
  0x39   :  { %p209_p9 = pnand %p207_p8, %p204_p7 }
  0x3b   :  { %212 = shalt.err (!%p209_p9)
}
  0x3c   :  { %135 = dma.vmem_to_hbm [thread:$0]  %s130_s1, 1536, %s332_s4, [#allocation6], %s220_s25, %s220_s25, %s221_s26  }
  0x3d   :  { %217 = dma.done.wait [#allocation6], 1536  }
  0x3e   :  { %218 = vsyncadd [#allocation6], 4294965760 }
  0x3f   :  { %139 = vsyncpa [#allocation5], 1 }
  0x40   :  { %140 = vsyncpa [#allocation8], 1 }
  0x41   :  { %141 = vsyncpa [#allocation6], 1 }

</bundles_post_ra>
